<compile_context>
chip_gen: v7x
topology: tpu7x:2x2x1
jax: 0.10.0
libtpu: 0.0.40
codegen_flags: <defaults>
</compile_context>

<pallas_src>
import functools

import jax
import jax.numpy as jnp
from jax.experimental import pallas as pl
from jax.experimental.pallas import tpu as pltpu


def _cdiv(a, b):
    return -(-a // b)


def _device_kind():
    try:
        return jax.devices()[0].device_kind.lower()
    except Exception:
        return ""


def _pick_tile(n_rows, row_bytes, align, budget_bytes):
    """Rows per block so one double-buffered input set stays within budget."""
    t = budget_bytes // max(1, row_bytes)
    t = max(align, (t // align) * align)
    t = min(t, 8192)
    if n_rows <= t:
        return n_rows      # full first-dim extent is always a legal block dim
    return t               # aligned; ragged last tile is masked in-kernel


def _cw_loss_packed_kernel(logits_ref, targets_ref, out_ref, *,
                           margin, true_b, tiles_per_chunk,
                           c_pad, k, log2_cpad, upcast):
    """Small-C path: k = 128 // c_pad samples packed per 128-lane row."""
    c = pl.program_id(0)       # parallel chunk index
    t = pl.program_id(1)       # batch-tile index within the chunk (reduction)

    @pl.when(t == 0)
    def _():
        out_ref[...] = jnp.zeros_like(out_ref)

    x = logits_ref[...]
    if upcast:
        x = x.astype(jnp.float32)
    tgt = targets_ref[...]                               # (R, W) int32, per-lane target
    R, W = x.shape                                       # W == 128

    lane = jax.lax.broadcasted_iota(jnp.int32, (1, W), 1)
    class_id = lane & (c_pad - 1)                        # lane % c_pad (c_pad is pow2)
    is_target = class_id == tgt                          # (R, W) bool

    zero = jnp.zeros((), dtype=x.dtype)
    neg1000 = jnp.asarray(-1000.0, dtype=x.dtype)
    self_lane = jnp.where(is_target, x, zero)            # target logit, 0 elsewhere
    other_lane = jnp.where(is_target, neg1000, x)        # target slot pinned to -1000

    # Segmented sum / max over each c_pad-wide lane group via a roll tree
    # (XLU slots, essentially free next to the DMA).  After log2(c_pad) steps
    # lane j holds the reduction over lanes [j, j + c_pad); segment-start
    # lanes (j % c_pad == 0) never wrap around the 128-lane row.
    s = 1
    while s < c_pad:
        self_lane = self_lane + pltpu.roll(self_lane, W - s, 1)
        other_lane = jnp.maximum(other_lane, pltpu.roll(other_lane, W - s, 1))
        s *= 2

    per_lane = jnp.maximum(self_lane.astype(jnp.float32)
                           - other_lane.astype(jnp.float32) + margin, 0.0)

    # Keep only segment-start lanes of samples < true batch size (masks the
    # ragged last tile, wrapper padding rows and any duplicated chunk tile).
    row_start = (c * tiles_per_chunk + t) * R
    row_id = row_start + jax.lax.broadcasted_iota(jnp.int32, (R, 1), 0)
    sample_id = row_id * k + (lane >> log2_cpad)          # (R, W)
    valid = (class_id == 0) & (sample_id < true_b)

    contrib = jnp.where(valid, per_lane, 0.0)
    out_ref[...] = out_ref[...] - jnp.sum(contrib, keepdims=True)


def _cw_loss_wide_kernel(logits_ref, targets_ref, out_ref, *,
                         margin, true_b, tiles_per_chunk, upcast):
    """Wide-C path (C >= 128): one sample per row, axis-1 reductions."""
    c = pl.program_id(0)
    t = pl.program_id(1)

    @pl.when(t == 0)
    def _():
        out_ref[...] = jnp.zeros_like(out_ref)

    x = logits_ref[...]
    if upcast:
        x = x.astype(jnp.float32)
    tgt = targets_ref[...]                               # (R, 1) int32
    R, C = x.shape

    class_id = jax.lax.broadcasted_iota(jnp.int32, (1, C), 1)   # (1, C), broadcast vs tgt
    is_target = class_id == tgt                                   # (R, C)

    zero = jnp.zeros((), dtype=x.dtype)
    neg1000 = jnp.asarray(-1000.0, dtype=x.dtype)
    # Exactly one non-zero per row, so the sum is exact even in bf16.
    self_logit = jnp.sum(jnp.where(is_target, x, zero), axis=1,
                         keepdims=True).astype(jnp.float32)
    other_logit = jnp.max(jnp.where(is_target, neg1000, x), axis=1,
                          keepdims=True).astype(jnp.float32)

    per_sample = jnp.maximum(self_logit - other_logit + margin, 0.0)

    # Mask rows past the true batch size (ragged last tile / duplicated tile).
    row_start = (c * tiles_per_chunk + t) * R
    row_id = row_start + jax.lax.broadcasted_iota(jnp.int32, (R, 1), 0)
    per_sample = jnp.where(row_id < true_b, per_sample, 0.0)

    out_ref[...] = out_ref[...] - jnp.sum(per_sample, keepdims=True)


def cw_loss(logits, targets, num_classes, margin=50.0, reduce=True):
    """CW loss. logits: (B, num_classes) float, targets: (B,) int."""
    B, C = logits.shape
    assert C == num_classes, (C, num_classes)

    kind = _device_kind()
    num_cores = 2 if "v7" in kind else 1            # v7x: 2 TCs/chip; v5e/v6e: 1
    is_v5 = "v5" in kind
    buffer_budget = (8 if "v6" in kind else 4) * 1024 * 1024
    vmem_limit = 32 * 1024 * 1024                   # explicit; safe on all generations

    itemsize = jnp.dtype(logits.dtype).itemsize
    upcast = bool(is_v5 and itemsize != 4)          # v5e has no bf16 VALU
    align = {4: 8, 2: 16, 1: 32}.get(itemsize, 8)   # sublane alignment per dtype

    targets = targets.astype(jnp.int32)

    packed = C < 128
    if packed:
        # Pack k samples per 128-lane row; pad classes to a power of two.
        c_pad = 1 << max(0, (C - 1).bit_length())
        k = 128 // c_pad
        w = k * c_pad                                # == 128
        rows = _cdiv(B, k)
        b_pad = rows * k
        # Class-padding must never win the non-target max; the reference max
        # always includes the -1000 pinned target slot, so -1e9 is safe.
        logits_in = jnp.pad(logits, ((0, b_pad - B), (0, c_pad - C)),
                            constant_values=-1e9).reshape(rows, w)
        targets_in = jnp.repeat(
            jnp.pad(targets, (0, b_pad - B)).reshape(rows, k), c_pad, axis=1)
        n_rows, lanes, tgt_lanes = rows, w, w
    else:
        logits_in = logits
        targets_in = targets.reshape(B, 1)
        n_rows, lanes, tgt_lanes = B, C, 1

    # Per-row VMEM bytes: lane-padded logits + lane-padded int32 targets buffer.
    row_bytes = (_cdiv(lanes, 128) * 128 * itemsize
                 + _cdiv(tgt_lanes, 128) * 128 * 4)
    tb = _pick_tile(n_rows, row_bytes, align, buffer_budget)

    num_tiles = _cdiv(n_rows, tb)
    num_chunks = max(1, min(num_cores, num_tiles))
    tiles_per_chunk = _cdiv(num_tiles, num_chunks)

    def blk(ci, ti):
        # Clamp so (num_chunks * tiles_per_chunk) never indexes past the real
        # tile count; a duplicated tile is masked in-kernel via sample ids.
        idx = jnp.minimum(ci * tiles_per_chunk + ti, num_tiles - 1)
        return (idx, 0)

    if packed:
        kernel = functools.partial(
            _cw_loss_packed_kernel, margin=float(margin), true_b=B,
            tiles_per_chunk=tiles_per_chunk, c_pad=c_pad, k=k,
            log2_cpad=c_pad.bit_length() - 1, upcast=upcast)
    else:
        kernel = functools.partial(
            _cw_loss_wide_kernel, margin=float(margin), true_b=B,
            tiles_per_chunk=tiles_per_chunk, upcast=upcast)

    cost = pl.CostEstimate(
        flops=6 * n_rows * lanes,
        transcendentals=0,
        bytes_accessed=(n_rows * lanes * itemsize
                        + n_rows * tgt_lanes * 4 + num_chunks * 4))

    partials = pl.pallas_call(
        kernel,
        out_shape=jax.ShapeDtypeStruct((num_chunks, 1), jnp.float32),
        grid_spec=pltpu.PrefetchScalarGridSpec(
            num_scalar_prefetch=0,
            grid=(num_chunks, tiles_per_chunk),
            in_specs=[
                pl.BlockSpec((tb, lanes), blk),        # logits tile (input dtype)
                pl.BlockSpec((tb, tgt_lanes), blk),    # targets tile (int32)
            ],
            out_specs=pl.BlockSpec((1, 1), lambda ci, ti: (ci, 0)),
        ),
        compiler_params=pltpu.CompilerParams(
            dimension_semantics=("parallel", "arbitrary"),
            vmem_limit_bytes=vmem_limit),
        cost_estimate=cost,
    )(logits_in, targets_in)

    loss = jnp.sum(partials)
    if reduce:
        loss = loss / B
    return loss


def _cw_loss_ref(logits, targets, num_classes, margin=50.0, reduce=True):
    """Pure-JAX reference mirroring the PyTorch module."""
    onehot = jax.nn.one_hot(targets, num_classes, dtype=jnp.float32)
    logits = logits.astype(jnp.float32)
    self_loss = jnp.sum(onehot * logits, axis=1)
    other_loss = jnp.max((1.0 - onehot) * logits - onehot * 1000.0, axis=1)
    loss = -jnp.sum(jnp.maximum(self_loss - other_loss + margin, 0.0))
    if reduce:
        loss = loss / onehot.shape[0]
    return loss


if __name__ == "__main__":
    key = jax.random.PRNGKey(0)
    k1, k2, k3, k4 = jax.random.split(key, 4)
    margin = 50.0

    # Case 1: classifier-sized class count (C < 128) -> lane-packed kernel path.
    logits_small = jax.random.normal(k1, (8, 10), dtype=jnp.float32) * 5.0
    targets_small = jax.random.randint(k2, (8,), 0, 10, dtype=jnp.int32)
    out_small = jax.block_until_ready(
        cw_loss(logits_small, targets_small, 10, margin=margin, reduce=True))
    ref_small = _cw_loss_ref(logits_small, targets_small, 10, margin=margin, reduce=True)
    assert jnp.allclose(out_small, ref_small, rtol=1e-5, atol=1e-5), (out_small, ref_small)

    # Case 2: wide class count (C >= 128) -> plain batch-tiled kernel path.
    logits_wide = jax.random.normal(k3, (16, 256), dtype=jnp.float32) * 5.0
    targets_wide = jax.random.randint(k4, (16,), 0, 256, dtype=jnp.int32)
    out_wide = jax.block_until_ready(
        cw_loss(logits_wide, targets_wide, 256, margin=margin, reduce=True))
    ref_wide = _cw_loss_ref(logits_wide, targets_wide, 256, margin=margin, reduce=True)
    assert jnp.allclose(out_wide, ref_wide, rtol=1e-5, atol=1e-5), (out_wide, ref_wide)

    print("KERNEL_OK")
</pallas_src>

<mosaic_0001>
module attributes {stable_mosaic.version = 11 : i64} {
  func.func @_cw_loss_packed_kernel(%arg0: i32, %arg1: i32, %arg2: memref<1x128xf32, #tpu.memory_space<vmem>>, %arg3: memref<1x128xi32, #tpu.memory_space<vmem>>, %arg4: memref<1x1xf32, #tpu.memory_space<vmem>>) attributes {dimension_semantics = [#tpu.dimension_semantics<parallel>, #tpu.dimension_semantics<arbitrary>], iteration_bounds = array<i64: 1, 1>, scalar_prefetch = 0 : i64, scratch_operands = 0 : i64, tpu.core_type = #tpu.core_type<tc>, window_params = [{transform_indices = @transform_0, window_bounds = array<i64: 1, 128>}, {transform_indices = @transform_1, window_bounds = array<i64: 1, 128>}, {transform_indices = @transform_2, window_bounds = array<i64: 1, 1>}]} {
    %c0_i32 = arith.constant 0 : i32
    %0 = arith.cmpi eq, %arg1, %c0_i32 : i32
    %1 = arith.extui %0 : i1 to i32
    %c0_i32_0 = arith.constant 0 : i32
    %2 = arith.cmpi ne, %1, %c0_i32_0 : i32
    scf.if %2 {
      %cst_20 = arith.constant 0.000000e+00 : f32
      %61 = vector.broadcast %cst_20 : f32 to vector<1x1xf32>
      %c0_21 = arith.constant 0 : index
      %c0_22 = arith.constant 0 : index
      %62 = vector.load %arg4[%c0_21, %c0_22] : memref<1x1xf32, #tpu.memory_space<vmem>>, vector<1x1xf32>
      tpu.vector_store %arg4[%c0_21, %c0_22], %61 {strides = array<i32>} : memref<1x1xf32, #tpu.memory_space<vmem>>, vector<1x1xf32>,
    } else {
    }
    %c0 = arith.constant 0 : index
    %c0_1 = arith.constant 0 : index
    %3 = vector.load %arg2[%c0, %c0_1] : memref<1x128xf32, #tpu.memory_space<vmem>>, vector<1x128xf32>
    %c0_2 = arith.constant 0 : index
    %c0_3 = arith.constant 0 : index
    %4 = vector.load %arg3[%c0_2, %c0_3] : memref<1x128xi32, #tpu.memory_space<vmem>>, vector<1x128xi32>
    %5 = tpu.iota {dimensions = array<i32: 1>} : vector<1x128xi32>
    %c15_i32 = arith.constant 15 : i32
    %6 = vector.broadcast %c15_i32 : i32 to vector<1x128xi32>
    %7 = arith.andi %5, %6 : vector<1x128xi32>
    %8 = arith.cmpi eq, %7, %4 : vector<1x128xi32>
    %cst = arith.constant 0.000000e+00 : f32
    %9 = vector.broadcast %cst : f32 to vector<1x128xf32>
    %10 = arith.select %8, %3, %9 : vector<1x128xi1>, vector<1x128xf32>
    %cst_4 = arith.constant -1.000000e+03 : f32
    %11 = vector.broadcast %cst_4 : f32 to vector<1x128xf32>
    %12 = arith.select %8, %11, %3 : vector<1x128xi1>, vector<1x128xf32>
    %c127_i32 = arith.constant 127 : i32
    %13 = tpu.dynamic_rotate %10 by %c127_i32 dim 1 : vector<1x128xf32>, i32 -> vector<1x128xf32>
    %14 = arith.addf %10, %13 : vector<1x128xf32>
    %c127_i32_5 = arith.constant 127 : i32
    %15 = tpu.dynamic_rotate %12 by %c127_i32_5 dim 1 : vector<1x128xf32>, i32 -> vector<1x128xf32>
    %16 = arith.maximumf %12, %15 : vector<1x128xf32>
    %c126_i32 = arith.constant 126 : i32
    %17 = tpu.dynamic_rotate %14 by %c126_i32 dim 1 : vector<1x128xf32>, i32 -> vector<1x128xf32>
    %18 = arith.addf %14, %17 : vector<1x128xf32>
    %c126_i32_6 = arith.constant 126 : i32
    %19 = tpu.dynamic_rotate %16 by %c126_i32_6 dim 1 : vector<1x128xf32>, i32 -> vector<1x128xf32>
    %20 = arith.maximumf %16, %19 : vector<1x128xf32>
    %c124_i32 = arith.constant 124 : i32
    %21 = tpu.dynamic_rotate %18 by %c124_i32 dim 1 : vector<1x128xf32>, i32 -> vector<1x128xf32>
    %22 = arith.addf %18, %21 : vector<1x128xf32>
    %c124_i32_7 = arith.constant 124 : i32
    %23 = tpu.dynamic_rotate %20 by %c124_i32_7 dim 1 : vector<1x128xf32>, i32 -> vector<1x128xf32>
    %24 = arith.maximumf %20, %23 : vector<1x128xf32>
    %c120_i32 = arith.constant 120 : i32
    %25 = tpu.dynamic_rotate %22 by %c120_i32 dim 1 : vector<1x128xf32>, i32 -> vector<1x128xf32>
    %26 = arith.addf %22, %25 : vector<1x128xf32>
    %c120_i32_8 = arith.constant 120 : i32
    %27 = tpu.dynamic_rotate %24 by %c120_i32_8 dim 1 : vector<1x128xf32>, i32 -> vector<1x128xf32>
    %28 = arith.maximumf %24, %27 : vector<1x128xf32>
    %29 = arith.subf %26, %28 : vector<1x128xf32>
    %cst_9 = arith.constant 5.000000e+01 : f32
    %30 = vector.broadcast %cst_9 : f32 to vector<1x128xf32>
    %31 = arith.addf %29, %30 : vector<1x128xf32>
    %cst_10 = arith.constant 0.000000e+00 : f32
    %32 = vector.broadcast %cst_10 : f32 to vector<1x128xf32>
    %33 = arith.maximumf %31, %32 : vector<1x128xf32>
    %c1_i32 = arith.constant 1 : i32
    %34 = arith.muli %arg0, %c1_i32 : i32
    %35 = arith.addi %34, %arg1 : i32
    %c1_i32_11 = arith.constant 1 : i32
    %36 = arith.muli %35, %c1_i32_11 : i32
    %37 = tpu.iota {dimensions = array<i32: 0>} : vector<1x1xi32>
    %38 = vector.broadcast %36 : i32 to vector<1x1xi32>
    %39 = arith.addi %38, %37 : vector<1x1xi32>
    %c8_i32 = arith.constant 8 : i32
    %40 = vector.broadcast %c8_i32 : i32 to vector<1x1xi32>
    %41 = arith.muli %39, %40 : vector<1x1xi32>
    %c4_i32 = arith.constant 4 : i32
    %42 = vector.broadcast %c4_i32 : i32 to vector<1x128xi32>
    %43 = arith.shrsi %5, %42 : vector<1x128xi32>
    %44 = vector.broadcast %41 : vector<1x1xi32> to vector<1x128xi32>
    %45 = arith.addi %44, %43 : vector<1x128xi32>
    %c0_i32_12 = arith.constant 0 : i32
    %46 = vector.broadcast %c0_i32_12 : i32 to vector<1x128xi32>
    %47 = arith.cmpi eq, %7, %46 : vector<1x128xi32>
    %c8_i32_13 = arith.constant 8 : i32
    %48 = vector.broadcast %c8_i32_13 : i32 to vector<1x128xi32>
    %49 = arith.cmpi slt, %45, %48 : vector<1x128xi32>
    %50 = arith.andi %47, %49 : vector<1x128xi1>
    %cst_14 = arith.constant 0.000000e+00 : f32
    %51 = vector.broadcast %cst_14 : f32 to vector<1x128xf32>
    %52 = arith.select %50, %33, %51 : vector<1x128xi1>, vector<1x128xf32>
    %c0_15 = arith.constant 0 : index
    %c0_16 = arith.constant 0 : index
    %53 = vector.load %arg4[%c0_15, %c0_16] : memref<1x1xf32, #tpu.memory_space<vmem>>, vector<1x1xf32>
    %54 = vector.shape_cast %52 : vector<1x128xf32> to vector<1x1x128xf32>
    %cst_17 = arith.constant dense<0.000000e+00> : vector<1xf32>
    %55 = vector.multi_reduction <add>, %54, %cst_17 [1, 2] : vector<1x1x128xf32> to vector<1xf32>
    %56 = vector.shape_cast %55 : vector<1xf32> to vector<1x1x1xf32>
    %57 = vector.extract %56[0, 0, 0] : f32 from vector<1x1x1xf32>
    %58 = vector.broadcast %57 : f32 to vector<1x1xf32>
    %59 = arith.subf %53, %58 : vector<1x1xf32>
    %c0_18 = arith.constant 0 : index
    %c0_19 = arith.constant 0 : index
    %60 = vector.load %arg4[%c0_18, %c0_19] : memref<1x1xf32, #tpu.memory_space<vmem>>, vector<1x1xf32>
    tpu.vector_store %arg4[%c0_18, %c0_19], %59 {strides = array<i32>} : memref<1x1xf32, #tpu.memory_space<vmem>>, vector<1x1xf32>,
    return
  }
  func.func @transform_0(%arg0: i32, %arg1: i32) -> (i32, i32) {
    %c1_i32 = arith.constant 1 : i32
    %0 = arith.muli %arg0, %c1_i32 : i32
    %1 = arith.addi %0, %arg1 : i32
    %c0_i32 = arith.constant 0 : i32
    %2 = arith.minsi %1, %c0_i32 : i32
    %c0_i32_0 = arith.constant 0 : i32
    %c0_i32_1 = arith.constant 0 : i32
    return %2, %c0_i32_0 : i32, i32
  }
  func.func @transform_1(%arg0: i32, %arg1: i32) -> (i32, i32) {
    %c1_i32 = arith.constant 1 : i32
    %0 = arith.muli %arg0, %c1_i32 : i32
    %1 = arith.addi %0, %arg1 : i32
    %c0_i32 = arith.constant 0 : i32
    %2 = arith.minsi %1, %c0_i32 : i32
    %c0_i32_0 = arith.constant 0 : i32
    %c0_i32_1 = arith.constant 0 : i32
    return %2, %c0_i32_0 : i32, i32
  }
  func.func @transform_2(%arg0: i32, %arg1: i32) -> (i32, i32) {
    %c0_i32 = arith.constant 0 : i32
    %c0_i32_0 = arith.constant 0 : i32
    return %arg0, %c0_i32 : i32, i32
  }
}

</mosaic_0001>

<bundles_post_ra>
// kernel: tpu_custom_call.1
= control target key start
LH: loop header
LB: loop body
LE: loop exit
PB: predicated region body
PF: predicated region fallthrough
CT: control target
= control target key end

     0   :  { %7 = vsyncpa [#allocation3], 0  ;;  %s253_s0 = inlined_call_operand.hbm [shape: f32[1,128], index: 0, kind: input, shape index: {}]   ;;  %s254_s1 = inlined_call_operand.vmem [shape: s32[1,128], index: 1, kind: input, shape index: {}]   ;;  %s255_s2 = inlined_call_operand.hbm [shape: f32[1,1], index: 2, kind: output, shape index: {}]  }
   0x1   :  { %8 = vsyncpa [#allocation4], 0  ;;  %s202_s9 = smov [#allocation2]   ;;  %s154_s13 = scalar_lea.hbm %s253_s0, 16 }
   0x2   :  { %s20_s10 = sshll.u32 %s202_s9, 4  ;;  %p155_p0 = scmp.ne.s32.totalorder %s253_s0, %s154_s13  ;;  %s21_s10 = int_to_ptr.vmem [resolvable:$true] %s20_s10 }
   0x3   :  { %p158_p1 = scmp.lt.u32.totalorder %s154_s13, %s253_s0 }
   0x5   :  { %p160_p2 = pnand %p158_p1, %p155_p0 }
   0x7   :  { %163 = shalt.err (!%p160_p2)
}
   0x8   :  { %s164_s18 = scalar_lea.vmem %s21_s10, 16  ;;  %s168_s19 = scalar_lea.vmem %s21_s10, 32 }
   0x9   :  { %p165_p3 = scmp.ne.s32.totalorder %s21_s10, %s164_s18  ;;  %p169_p4 = scmp.lt.s32.totalorder %s21_s10, %s21_s10 }
   0xa   :  { %p170_p5 = scmp.lt.s32.totalorder %s168_s19, %s164_s18 }
   0xc   :  { %p171_p6 = por %p170_p5, %p169_p4 }
   0xe   :  { %p172_p7 = pnand %p171_p6, %p165_p3 }
  0x10   :  { %175 = shalt.err (!%p172_p7)
}
  0x11   :  { %23 = dma.hbm_to_vmem [thread:$0]  %s253_s0, 16, %s21_s10, [#allocation3]  }
  0x12   :  { %198 = dma.done.wait [#allocation3], 16  }
  0x13   :  { %199 = vsyncadd [#allocation3], 4294967280  ;;  %vm60_vm0 = vcmask 0   ;;  %v64_v0 = vlaneseq  ;;  %v203_v1 = vmov 0.0   ;;  %v62_v4 = vld [vmem:[#allocation2] sm:$0x1] }
  0x14   :  { %61 = vst.msk [vmem:[#allocation5] sm:$0x1] %vm60_vm0, %v203_v1  ;;  %v63_v5 = vld [vmem:[%s254_s1] sm:$0x1]  ;;  %s204_s24 = smov 127   ;;  %s205_s0 = smov 126  }
  0x15   :  { %v65_v2 = vand.u32 127, %v64_v0  ;;  %s206_s25 = smov 124   ;;  %s207_s1 = smov 120   ;;  %v99_v20 = vshrl.u32 %v64_v0, 7  ;;  %vm110_vm5 = vcmask 1040384  }
  0x16   :  { %s208_s26 = smov [#allocation5]  }
  0x17   :  { %v66_v3 = vand.u32 15, %v65_v2  ;;  %v102_v21 = vmul.u32 8, %v99_v20  ;;  %v103_v22 = vshra.s32 %v65_v2, 4  ;;  %s131_s27 = sshll.u32 %s208_s26, 4  ;;  %s132_s27 = int_to_ptr.vmem [resolvable:$true] %s131_s27 }
  0x18   :  { %s176_s29 = scalar_lea.vmem %s132_s27, 16  ;;  %s180_s30 = scalar_lea.vmem %s132_s27, 32 }
  0x19   :  { %vm67_vm1 = vcmp.eq.s32.totalorder %v66_v3, %v63_v5  ;;  %v104_v24 = vadd.s32 %v103_v22, %v102_v21  ;;  %vm105_vm2 = vcmp.eq.s32.totalorder %v66_v3, 0  ;;  %p177_p8 = scmp.ne.s32.totalorder %s132_s27, %s176_s29  ;;  %p181_p9 = scmp.lt.s32.totalorder %s132_s27, %s132_s27 }
  0x1a   :  { %v68_v6 = vsel %vm67_vm1, %v62_v4, 0.0  ;;  %v69_v7 = vsel %vm67_vm1, -1000.0, %v62_v4  ;;  %p182_p10 = scmp.lt.s32.totalorder %s180_s30, %s176_s29 }
  0x1b   :  { %70 = vrot.lane.b32.xlu0 %v68_v6, %s204_s24  ;;  %vm106_vm3 = vcmp.lt.s32.totalorder %v104_v24, 8  ;;  %v109_v40 = vld [vmem:[#allocation5] sm:$0x1] }
  0x1c   :  { %vm107_vm4 = vmand %vm105_vm2, %vm106_vm3  ;;  %p183_p11 = por %p182_p10, %p181_p9 }
  0x1e   :  { %p184_p12 = pnand %p183_p11, %p177_p8 }
  0x1f   :  { %73 = vrot.lane.b32.xlu0 %v69_v7, %s204_s24 }
  0x8d   :  { %v71_v8 = vpop.permute.xlu0 %70 }
  0x8e   :  { %v72_v9 = vadd.f32 %v71_v8, %v68_v6 }
  0x90   :  { %76 = vrot.lane.b32.xlu1 %v72_v9, %s205_s0 }
  0x91   :  { %v74_v10 = vpop.permute.xlu0 %73 }
  0x92   :  { %v75_v11 = vmax.f32 %v69_v7, %v74_v10 }
  0x94   :  { %79 = vrot.lane.b32.xlu1 %v75_v11, %s205_s0 }
 0x102   :  { %v77_v12 = vpop.permute.xlu1 %76 }
 0x103   :  { %v78_v13 = vadd.f32 %v77_v12, %v72_v9 }
 0x105   :  { %82 = vrot.lane.b32.xlu0 %v78_v13, %s206_s25 }
 0x106   :  { %v80_v14 = vpop.permute.xlu1 %79 }
 0x107   :  { %v81_v15 = vmax.f32 %v75_v11, %v80_v14 }
 0x109   :  { %85 = vrot.lane.b32.xlu1 %v81_v15, %s206_s25 }
 0x177   :  { %v83_v16 = vpop.permute.xlu0 %82 }
 0x178   :  { %v84_v17 = vadd.f32 %v83_v16, %v78_v13 }
 0x17a   :  { %88 = vrot.lane.b32.xlu0 %v84_v17, %s207_s1 }
 0x17b   :  { %v86_v18 = vpop.permute.xlu1 %85 }
 0x17c   :  { %v87_v19 = vmax.f32 %v81_v15, %v86_v18 }
 0x17e   :  { %91 = vrot.lane.b32.xlu1 %v87_v19, %s207_s1 }
 0x1ec   :  { %v89_v23 = vpop.permute.xlu0 %88 }
 0x1ed   :  { %v90_v26 = vadd.f32 %v89_v23, %v84_v17 }
 0x1f0   :  { %v92_v25 = vpop.permute.xlu1 %91 }
 0x1f1   :  { %v93_v27 = vmax.f32 %v87_v19, %v92_v25 }
 0x1f3   :  { %v94_v28 = vsub.f32 %v90_v26, %v93_v27 }
 0x1f5   :  { %v95_v29 = vadd.f32 50.0, %v94_v28 }
 0x1f7   :  { %v96_v30 = vmax.f32 %v95_v29, 0.0 }
 0x1f9   :  { %v108_v31 = vsel %vm107_vm4, %v96_v30, 0.0 }
 0x1fa   :  { %v111_v32 = vsel %vm110_vm5, %v108_v31, 0.0 }
 0x1fb   :  { %112 = vadd.xlane.f32.xlu0 %v111_v32 }
 0x288   :  { %v113_v33 = vpop.xlane.xlu0 %112 }
 0x289   :  { %v114_v34 = vrot.slane %v113_v33, 4 }
 0x28b   :  { %v115_v35 = vadd.f32 %v114_v34, %v113_v33 }
 0x28d   :  { %v116_v36 = vrot.slane %v115_v35, 2 }
 0x28f   :  { %v117_v37 = vadd.f32 %v116_v36, %v115_v35 }
 0x291   :  { %v118_v38 = vrot.slane %v117_v37, 1 }
 0x293   :  { %v119_v39 = vadd.f32 %v118_v38, %v117_v37 }
 0x295   :  { %145 = vpush %v119_v39 }
 0x2c6   :  { %s146_s28 = spop %145 }
 0x2c7   :  { %v121_v41 = vstv %s146_s28 }
 0x2c8   :  { %v122_v42 = vsub.f32 %v109_v40, %v121_v41 }
 0x2ca   :  { %124 = vst.msk [vmem:[#allocation5] sm:$0x1] %vm60_vm0, %v122_v42 }
 0x2cb   :  { %187 = shalt.err (!%p184_p12)
}
 0x2cc   :  { %s188_s5 = scalar_lea.hbm %s255_s2, 16 }
 0x2cd   :  { %p189_p13 = scmp.ne.s32.totalorder %s255_s2, %s188_s5  ;;  %p192_p0 = scmp.lt.u32.totalorder %s188_s5, %s255_s2 }
 0x2cf   :  { %p194_p1 = pnand %p192_p0, %p189_p13 }
 0x2d1   :  { %197 = shalt.err (!%p194_p1)
}
 0x2d2   :  { %134 = dma.vmem_to_hbm [thread:$0]  %s132_s27, 16, %s255_s2, [#allocation4]  }
 0x2d3   :  { %200 = dma.done.wait [#allocation4], 16  }
 0x2d4   :  { %201 = vsyncadd [#allocation4], 4294967280 }
 0x2d5   :  { %138 = vsyncpa [#allocation3], 1 }
 0x2d6   :  { %139 = vsyncpa [#allocation4], 1 }

</bundles_post_ra>
